<compile_context>
chip_gen: v6e
topology: v6e:2x2x1
jax: 0.10.0
libtpu: 0.0.40
codegen_flags: <defaults>
</compile_context>

<pallas_src>
import functools
import math

import jax
import jax.numpy as jnp
from jax import lax
from jax.experimental import pallas as pl
from jax.experimental.pallas import tpu as pltpu  # noqa: F401 (TPU backend)

# ----------------------------- config (small) -------------------------------
B = 2          # batch
T = 16         # visual frames
V = 8          # raw visual feature dim
H = 32         # hidden size of frame module / embeddings
POOL = 2       # AvgPool1d kernel == stride
TP = T // POOL # pooled clip count
L = 8          # number of words
DT = 16        # word embedding dim
VOCAB = 16     # text logits dim
CVIS = 4       # visual logits channels (before transpose(1,2))
LANE = 128     # TPU lane width; all feature dims padded to this

# ---- weight-slab row layout (every section starts on an 8-row boundary) ----
R_WF = 0                 # (V, LANE)        frame 1x1-conv weight (lane-padded)
R_BF = 8                 # (1, LANE)        frame bias
R_POOL = 16              # (B*TP, B*T)      block-diag AvgPool matrix
R_WT = 32                # (DT+2, LANE)     merged [w_text | w_q | 0] (+2 zero mask rows)
R_BT = 56                # (1, LANE)        merged [b_text | b_q | 0]
R_WVT = 64               # (CVIS, LANE)     w_vis^T (lane-padded)
R_BVT = 72               # (CVIS, 1)        b_vis^T (col 0)
ROWS_W = 80

# ---- output-slab row layout -------------------------------------------------
RO_TEXT = 0              # (B*L, LANE)      masked text-logit slab (cols 0:VOCAB used)
RO_STAT = 16             # (2*B, LANE)      rows 0:B = vce, rows B:2B = tqe slab
RO_IOU = 24              # (B*TP, TP)       per-batch gram / IoU logits, stacked
RO_VIS = 40              # (CVIS, B*TP)     visual logits, already transposed
ROWS_O = 48


# ------------------------------- fused kernel -------------------------------
def _tan_kernel(txt_ref, vis_ref, w_ref, out_ref, *, iou_scale, inv_tp):
    # ---------------- frame module: 1x1 Conv1d -> ReLU -> AvgPool1d ----------
    wf = w_ref[R_WF:R_WF + V, :]                               # (V, 128)
    bf = w_ref[R_BF:R_BF + 1, :]                               # (1, 128)
    y = jnp.dot(vis_ref[...], wf, preferred_element_type=jnp.float32)
    y = jnp.maximum(y + bf, 0.0)                               # (B*T, 128)
    # AvgPool1d(kernel=stride=POOL) as a block-diagonal (B*TP, B*T) matmul.
    pool = w_ref[R_POOL:R_POOL + B * TP, 0:B * T]              # (B*TP, B*T)
    vis_h = jnp.dot(pool, y, preferred_element_type=jnp.float32)  # (B*TP, 128)

    # ---------------- text heads: one merged matmul over [x|tmask|wmask] -----
    txt = txt_ref[...]                                         # (B*L, DT+2)
    wt = w_ref[R_WT:R_WT + DT + 2, :]                          # (DT+2, 128); mask rows = 0
    bt = w_ref[R_BT:R_BT + 1, :]                               # (1, 128)
    t = jnp.dot(txt, wt, preferred_element_type=jnp.float32) + bt   # (B*L, 128)
    tmask = txt[:, DT:DT + 1]                                  # (B*L, 1)
    wmask = txt[:, DT + 1:DT + 2]                              # (B*L, 1)
    # cols [0:VOCAB] = masked text logits, cols [VOCAB:VOCAB+H] = query proj.
    out_ref[RO_TEXT:RO_TEXT + B * L, :] = t * wmask            # lane-dense store

    # ---------------- per-batch reductions (static B loop, 8-row aligned) ----
    t_masked = t * tmask                                       # (B*L, 128)
    stats = []
    grams = []
    for b in range(B):
        vh_b = vis_h[b * TP:(b + 1) * TP, :]                   # (TP, 128)
        # gram / IoU logits: vh_b @ vh_b^T via NT dot_general (no transpose op)
        grams.append(lax.dot_general(
            vh_b, vh_b, (((1,), (1,)), ((), ())),
            preferred_element_type=jnp.float32) * iou_scale)   # (TP, TP)
        # visual content embedding: plain mean over pooled clips
        stats.append(jnp.sum(vh_b, axis=0, keepdims=True) * inv_tp)  # (1, 128)
    for b in range(B):
        # masked text-query mean (query columns live at [VOCAB:VOCAB+H])
        s_b = jnp.sum(t_masked[b * L:(b + 1) * L, :], axis=0, keepdims=True)
        c_b = jnp.maximum(
            jnp.sum(tmask[b * L:(b + 1) * L, :], axis=0, keepdims=True), 1.0)
        stats.append(s_b / c_b)                                # (1, 128)
    out_ref[RO_STAT:RO_STAT + 2 * B, :] = jnp.concatenate(stats, axis=0)
    out_ref[RO_IOU:RO_IOU + B * TP, 0:TP] = jnp.concatenate(grams, axis=0)

    # ---------------- visual logits, produced already transposed -------------
    wvt = w_ref[R_WVT:R_WVT + CVIS, :]                         # (CVIS, 128)
    bvt = w_ref[R_BVT:R_BVT + CVIS, 0:1]                       # (CVIS, 1)
    vl = lax.dot_general(wvt, vis_h, (((1,), (1,)), ((), ())),
                         preferred_element_type=jnp.float32) + bvt  # (CVIS, B*TP)
    out_ref[RO_VIS:RO_VIS + CVIS, 0:B * TP] = vl


# ------------------------------ parameters ----------------------------------
def init_params(key):
    ks = jax.random.split(key, 8)

    def w(k, shape):
        return (jax.random.normal(k, shape, jnp.float32)
                / math.sqrt(shape[0])).astype(jnp.float32)

    return {
        "w_frame": w(ks[0], (V, H)),      "b_frame": jnp.zeros((1, H), jnp.float32),
        "w_text":  w(ks[1], (DT, VOCAB)), "b_text":  jnp.zeros((1, VOCAB), jnp.float32),
        "w_vis":   w(ks[2], (H, CVIS)),   "b_vis":   jnp.zeros((1, CVIS), jnp.float32),
        "w_q":     w(ks[3], (DT, H)),     "b_q":     jnp.zeros((1, H), jnp.float32),
    }


def pack_params(p):
    """Pack ALL constant operands into one (ROWS_W, 128) slab (built once)."""
    f32 = jnp.float32
    w = jnp.zeros((ROWS_W, LANE), f32)
    # frame module weights (padded cols stay exactly 0 through ReLU/pool)
    w = w.at[R_WF:R_WF + V, :H].set(p["w_frame"])
    w = w.at[R_BF, :H].set(p["b_frame"][0])
    # block-diagonal AvgPool1d matrix over the batch-stacked frame rows
    pool = jnp.repeat(jnp.eye(B * TP, dtype=f32), POOL, axis=1) / POOL
    w = w.at[R_POOL:R_POOL + B * TP, :B * T].set(pool)
    # merged text weights [w_text | w_q | 0]; 2 extra zero rows for mask lanes
    w = w.at[R_WT:R_WT + DT, :VOCAB].set(p["w_text"])
    w = w.at[R_WT:R_WT + DT, VOCAB:VOCAB + H].set(p["w_q"])
    w = w.at[R_BT, :VOCAB].set(p["b_text"][0])
    w = w.at[R_BT, VOCAB:VOCAB + H].set(p["b_q"][0])
    # visual-logit head, pre-transposed so the kernel emits (CVIS, B*TP)
    w = w.at[R_WVT:R_WVT + CVIS, :H].set(p["w_vis"].T)
    w = w.at[R_BVT:R_BVT + CVIS, 0].set(p["b_vis"][0])
    return w


# -------------------------------- forward -----------------------------------
@jax.jit
def tan_forward(textual_input, textual_mask, word_mask, visual_input, wslab):
    Bn, Ln, Dn = textual_input.shape
    _, Tn, Vn = visual_input.shape

    # TODO(synk): config.TAN.VLBERT_MODULE (full VL-BERT transformer stack) is
    # not reconstructible from this module alone; it is replaced with
    # deterministic linear / similarity / pooling heads producing the same
    # six-output signature (kept identical to the previous version).

    # Fold both masks into the text slab as 2 extra lanes (their merged-weight
    # rows are zero) and stack the batch along rows -> 3 input DMA streams.
    tm = textual_mask.reshape(Bn * Ln, 1).astype(jnp.float32)
    wm = word_mask.reshape(Bn * Ln, 1).astype(jnp.float32)
    txt_slab = jnp.concatenate(
        [textual_input.reshape(Bn * Ln, Dn), tm, wm], axis=-1)   # (B*L, DT+2)
    vis2d = visual_input.reshape(Bn * Tn, Vn)                    # (B*T, V)

    kernel = functools.partial(_tan_kernel,
                               iou_scale=1.0 / math.sqrt(H),
                               inv_tp=1.0 / TP)

    flops = 2 * (B * T * V * LANE            # frame 1x1 conv
                 + (B * TP) * (B * T) * LANE # avg-pool matmul
                 + (B * L) * (DT + 2) * LANE # merged text matmul
                 + B * TP * LANE * TP        # per-batch grams
                 + CVIS * LANE * B * TP)     # visual logits
    bytes_accessed = 4 * (B * L * (DT + 2) + B * T * V
                          + ROWS_W * LANE + ROWS_O * LANE)

    o = pl.pallas_call(
        kernel,
        out_shape=jax.ShapeDtypeStruct((ROWS_O, LANE), jnp.float32),
        cost_estimate=pl.CostEstimate(flops=flops, transcendentals=0,
                                      bytes_accessed=bytes_accessed),
    )(txt_slab, vis2d, wslab)

    # cheap wrapper-side slices of the single lane-dense output slab
    logits_text = o[RO_TEXT:RO_TEXT + Bn * Ln, :VOCAB].reshape(Bn, Ln, VOCAB)
    visual_content_emb = o[RO_STAT:RO_STAT + Bn, :H]                 # (B, H)
    text_query_emb = o[RO_STAT + Bn:RO_STAT + 2 * Bn, VOCAB:VOCAB + H]  # (B, H)
    logits_iou = o[RO_IOU:RO_IOU + Bn * TP, :TP].reshape(Bn, TP, TP)
    logits_visual = (o[RO_VIS:RO_VIS + CVIS, :Bn * TP]
                     .reshape(CVIS, Bn, TP).transpose(1, 0, 2))      # (B, CVIS, Tp)
    iou_mask_map = jnp.triu(jnp.ones((TP, TP), jnp.float32))         # valid moments

    return (logits_text, logits_visual, logits_iou, iou_mask_map,
            visual_content_emb, text_query_emb)


# --------------------------------- main --------------------------------------
if __name__ == "__main__":
    key = jax.random.PRNGKey(0)
    k_txt, k_vis, k_par = jax.random.split(key, 3)

    textual_input = jax.random.normal(k_txt, (B, L, DT), jnp.float32)
    visual_input = jax.random.normal(k_vis, (B, T, V), jnp.float32)

    lengths = jnp.array([L, L - 3], jnp.int32)
    textual_mask = (jnp.arange(L)[None, :] < lengths[:, None]).astype(
        jnp.float32)[..., None]                                   # (B, L, 1)
    word_mask = (jnp.arange(L)[None, :] % 3 == 0).astype(jnp.float32) \
        * textual_mask[..., 0]                                    # (B, L)

    params = init_params(k_par)
    wslab = pack_params(params)

    outs = tan_forward(textual_input, textual_mask, word_mask,
                       visual_input, wslab)
    outs = jax.block_until_ready(outs)

    expected = [(B, L, VOCAB), (B, CVIS, TP), (B, TP, TP), (TP, TP), (B, H), (B, H)]
    assert [tuple(o.shape) for o in outs] == expected, \
        [tuple(o.shape) for o in outs]
    print("KERNEL_OK")
</pallas_src>

<mosaic_0001>
module attributes {stable_mosaic.version = 11 : i64} {
  func.func @_tan_kernel(%arg0: memref<16x18xf32, #tpu.memory_space<vmem>>, %arg1: memref<32x8xf32, #tpu.memory_space<vmem>>, %arg2: memref<80x128xf32, #tpu.memory_space<vmem>>, %arg3: memref<48x128xf32, #tpu.memory_space<vmem>>) attributes {dimension_semantics = [], scalar_prefetch = 0 : i64, scratch_operands = 0 : i64, tpu.core_type = #tpu.core_type<tc>} {
    %c0 = arith.constant 0 : index
    %c0_0 = arith.constant 0 : index
    %0 = vector.load %arg2[%c0, %c0_0] : memref<80x128xf32, #tpu.memory_space<vmem>>, vector<8x128xf32>
    %c8 = arith.constant 8 : index
    %c0_1 = arith.constant 0 : index
    %1 = vector.load %arg2[%c8, %c0_1] : memref<80x128xf32, #tpu.memory_space<vmem>>, vector<1x128xf32>
    %c0_2 = arith.constant 0 : index
    %c0_3 = arith.constant 0 : index
    %2 = vector.load %arg1[%c0_2, %c0_3] : memref<32x8xf32, #tpu.memory_space<vmem>>, vector<32x8xf32>
    %cst = arith.constant dense<0.000000e+00> : vector<32x128xf32>
    %3 = tpu.matmul %2, %0, %cst {dimension_numbers = #tpu.dot_dimension_numbers<[1], [0], [0], [1], [0, 0, 1, 1], [], []>} : vector<32x8xf32>, vector<8x128xf32>, vector<32x128xf32> -> vector<32x128xf32>
    %4 = vector.broadcast %1 : vector<1x128xf32> to vector<32x128xf32>
    %5 = arith.addf %3, %4 : vector<32x128xf32>
    %cst_4 = arith.constant 0.000000e+00 : f32
    %6 = vector.broadcast %cst_4 : f32 to vector<32x128xf32>
    %7 = arith.maximumf %5, %6 : vector<32x128xf32>
    %c16 = arith.constant 16 : index
    %c0_5 = arith.constant 0 : index
    %8 = vector.load %arg2[%c16, %c0_5] : memref<80x128xf32, #tpu.memory_space<vmem>>, vector<16x32xf32>
    %cst_6 = arith.constant dense<0.000000e+00> : vector<16x128xf32>
    %9 = tpu.matmul %8, %7, %cst_6 {dimension_numbers = #tpu.dot_dimension_numbers<[1], [0], [0], [1], [0, 0, 1, 1], [], []>} : vector<16x32xf32>, vector<32x128xf32>, vector<16x128xf32> -> vector<16x128xf32>
    %c0_7 = arith.constant 0 : index
    %c0_8 = arith.constant 0 : index
    %10 = vector.load %arg0[%c0_7, %c0_8] : memref<16x18xf32, #tpu.memory_space<vmem>>, vector<16x18xf32>
    %c32 = arith.constant 32 : index
    %c0_9 = arith.constant 0 : index
    %11 = vector.load %arg2[%c32, %c0_9] : memref<80x128xf32, #tpu.memory_space<vmem>>, vector<18x128xf32>
    %c56 = arith.constant 56 : index
    %c0_10 = arith.constant 0 : index
    %12 = vector.load %arg2[%c56, %c0_10] : memref<80x128xf32, #tpu.memory_space<vmem>>, vector<1x128xf32>
    %cst_11 = arith.constant dense<0.000000e+00> : vector<16x128xf32>
    %13 = tpu.matmul %10, %11, %cst_11 {dimension_numbers = #tpu.dot_dimension_numbers<[1], [0], [0], [1], [0, 0, 1, 1], [], []>} : vector<16x18xf32>, vector<18x128xf32>, vector<16x128xf32> -> vector<16x128xf32>
    %14 = vector.broadcast %12 : vector<1x128xf32> to vector<16x128xf32>
    %15 = arith.addf %13, %14 : vector<16x128xf32>
    %16 = vector.extract_strided_slice %10 {offsets = [0, 16], sizes = [16, 1], strides = [1, 1]} : vector<16x18xf32> to vector<16x1xf32>
    %17 = vector.extract_strided_slice %10 {offsets = [0, 17], sizes = [16, 1], strides = [1, 1]} : vector<16x18xf32> to vector<16x1xf32>
    %18 = vector.broadcast %17 : vector<16x1xf32> to vector<16x128xf32>
    %19 = arith.mulf %15, %18 : vector<16x128xf32>
    %c0_12 = arith.constant 0 : index
    %c0_13 = arith.constant 0 : index
    %20 = vector.load %arg3[%c0_12, %c0_13] : memref<48x128xf32, #tpu.memory_space<vmem>>, vector<16x128xf32>
    tpu.vector_store %arg3[%c0_12, %c0_13], %19 {strides = array<i32>} : memref<48x128xf32, #tpu.memory_space<vmem>>, vector<16x128xf32>,
    %21 = vector.broadcast %16 : vector<16x1xf32> to vector<16x128xf32>
    %22 = arith.mulf %15, %21 : vector<16x128xf32>
    %23 = vector.extract_strided_slice %9 {offsets = [0, 0], sizes = [8, 128], strides = [1, 1]} : vector<16x128xf32> to vector<8x128xf32>
    %cst_14 = arith.constant dense<0.000000e+00> : vector<8x8xf32>
    %24 = tpu.matmul %23, %23, %cst_14 {dimension_numbers = #tpu.dot_dimension_numbers<[1], [1], [0], [0], [0, 0, 1, 0], [], []>} : vector<8x128xf32>, vector<8x128xf32>, vector<8x8xf32> -> vector<8x8xf32>
    %cst_15 = arith.constant 0.176776692 : f32
    %25 = vector.broadcast %cst_15 : f32 to vector<8x8xf32>
    %26 = arith.mulf %24, %25 : vector<8x8xf32>
    %cst_16 = arith.constant dense<0.000000e+00> : vector<128xf32>
    %27 = vector.multi_reduction <add>, %23, %cst_16 [0] : vector<8x128xf32> to vector<128xf32>
    %28 = vector.shape_cast %27 : vector<128xf32> to vector<1x128xf32>
    %cst_17 = arith.constant 1.250000e-01 : f32
    %29 = vector.broadcast %cst_17 : f32 to vector<1x128xf32>
    %30 = arith.mulf %28, %29 : vector<1x128xf32>
    %31 = vector.extract_strided_slice %9 {offsets = [8, 0], sizes = [8, 128], strides = [1, 1]} : vector<16x128xf32> to vector<8x128xf32>
    %cst_18 = arith.constant dense<0.000000e+00> : vector<8x8xf32>
    %32 = tpu.matmul %31, %31, %cst_18 {dimension_numbers = #tpu.dot_dimension_numbers<[1], [1], [0], [0], [0, 0, 1, 0], [], []>} : vector<8x128xf32>, vector<8x128xf32>, vector<8x8xf32> -> vector<8x8xf32>
    %cst_19 = arith.constant 0.176776692 : f32
    %33 = vector.broadcast %cst_19 : f32 to vector<8x8xf32>
    %34 = arith.mulf %32, %33 : vector<8x8xf32>
    %cst_20 = arith.constant dense<0.000000e+00> : vector<128xf32>
    %35 = vector.multi_reduction <add>, %31, %cst_20 [0] : vector<8x128xf32> to vector<128xf32>
    %36 = vector.shape_cast %35 : vector<128xf32> to vector<1x128xf32>
    %cst_21 = arith.constant 1.250000e-01 : f32
    %37 = vector.broadcast %cst_21 : f32 to vector<1x128xf32>
    %38 = arith.mulf %36, %37 : vector<1x128xf32>
    %39 = vector.extract_strided_slice %22 {offsets = [0, 0], sizes = [8, 128], strides = [1, 1]} : vector<16x128xf32> to vector<8x128xf32>
    %cst_22 = arith.constant dense<0.000000e+00> : vector<128xf32>
    %40 = vector.multi_reduction <add>, %39, %cst_22 [0] : vector<8x128xf32> to vector<128xf32>
    %41 = vector.shape_cast %40 : vector<128xf32> to vector<1x128xf32>
    %42 = vector.extract_strided_slice %16 {offsets = [0, 0], sizes = [8, 1], strides = [1, 1]} : vector<16x1xf32> to vector<8x1xf32>
    %cst_23 = arith.constant dense<0.000000e+00> : vector<1xf32>
    %43 = vector.multi_reduction <add>, %42, %cst_23 [0] : vector<8x1xf32> to vector<1xf32>
    %44 = vector.shape_cast %43 : vector<1xf32> to vector<1x1xf32>
    %cst_24 = arith.constant 1.000000e+00 : f32
    %45 = vector.broadcast %cst_24 : f32 to vector<1x1xf32>
    %46 = arith.maximumf %44, %45 : vector<1x1xf32>
    %47 = vector.broadcast %46 : vector<1x1xf32> to vector<1x128xf32>
    %48 = arith.divf %41, %47 : vector<1x128xf32>
    %49 = vector.extract_strided_slice %22 {offsets = [8, 0], sizes = [8, 128], strides = [1, 1]} : vector<16x128xf32> to vector<8x128xf32>
    %cst_25 = arith.constant dense<0.000000e+00> : vector<128xf32>
    %50 = vector.multi_reduction <add>, %49, %cst_25 [0] : vector<8x128xf32> to vector<128xf32>
    %51 = vector.shape_cast %50 : vector<128xf32> to vector<1x128xf32>
    %52 = vector.extract_strided_slice %16 {offsets = [8, 0], sizes = [8, 1], strides = [1, 1]} : vector<16x1xf32> to vector<8x1xf32>
    %cst_26 = arith.constant dense<0.000000e+00> : vector<1xf32>
    %53 = vector.multi_reduction <add>, %52, %cst_26 [0] : vector<8x1xf32> to vector<1xf32>
    %54 = vector.shape_cast %53 : vector<1xf32> to vector<1x1xf32>
    %cst_27 = arith.constant 1.000000e+00 : f32
    %55 = vector.broadcast %cst_27 : f32 to vector<1x1xf32>
    %56 = arith.maximumf %54, %55 : vector<1x1xf32>
    %57 = vector.broadcast %56 : vector<1x1xf32> to vector<1x128xf32>
    %58 = arith.divf %51, %57 : vector<1x128xf32>
    %59 = tpu.concatenate %30, %38, %48, %58 in 0 : vector<1x128xf32>, vector<1x128xf32>, vector<1x128xf32>, vector<1x128xf32> -> vector<4x128xf32>
    %c16_28 = arith.constant 16 : index
    %c0_29 = arith.constant 0 : index
    %60 = vector.load %arg3[%c16_28, %c0_29] : memref<48x128xf32, #tpu.memory_space<vmem>>, vector<4x128xf32>
    tpu.vector_store %arg3[%c16_28, %c0_29], %59 {strides = array<i32>} : memref<48x128xf32, #tpu.memory_space<vmem>>, vector<4x128xf32>,
    %61 = tpu.concatenate %26, %34 in 0 : vector<8x8xf32>, vector<8x8xf32> -> vector<16x8xf32>
    %c24 = arith.constant 24 : index
    %c0_30 = arith.constant 0 : index
    %62 = vector.load %arg3[%c24, %c0_30] : memref<48x128xf32, #tpu.memory_space<vmem>>, vector<16x8xf32>
    tpu.vector_store %arg3[%c24, %c0_30], %61 {strides = array<i32>} : memref<48x128xf32, #tpu.memory_space<vmem>>, vector<16x8xf32>,
    %c64 = arith.constant 64 : index
    %c0_31 = arith.constant 0 : index
    %63 = vector.load %arg2[%c64, %c0_31] : memref<80x128xf32, #tpu.memory_space<vmem>>, vector<4x128xf32>
    %c72 = arith.constant 72 : index
    %c0_32 = arith.constant 0 : index
    %64 = vector.load %arg2[%c72, %c0_32] : memref<80x128xf32, #tpu.memory_space<vmem>>, vector<4x1xf32>
    %cst_33 = arith.constant dense<0.000000e+00> : vector<4x16xf32>
    %65 = tpu.matmul %63, %9, %cst_33 {dimension_numbers = #tpu.dot_dimension_numbers<[1], [1], [0], [0], [0, 0, 1, 0], [], []>} : vector<4x128xf32>, vector<16x128xf32>, vector<4x16xf32> -> vector<4x16xf32>
    %66 = vector.broadcast %64 : vector<4x1xf32> to vector<4x16xf32>
    %67 = arith.addf %65, %66 : vector<4x16xf32>
    %c40 = arith.constant 40 : index
    %c0_34 = arith.constant 0 : index
    %68 = vector.load %arg3[%c40, %c0_34] : memref<48x128xf32, #tpu.memory_space<vmem>>, vector<4x16xf32>
    tpu.vector_store %arg3[%c40, %c0_34], %67 {strides = array<i32>} : memref<48x128xf32, #tpu.memory_space<vmem>>, vector<4x16xf32>,
    return
  }
}

</mosaic_0001>

<bundles_post_ra>
// kernel: tan_forward.1
= control target key start
LH: loop header
LB: loop body
LE: loop exit
PB: predicated region body
PF: predicated region fallthrough
CT: control target
= control target key end

     0   :  { %vm24_vm0 = vcmask 64512   ;;  %vm227_vm1 = vcmask 1041408   ;;  %vm220_vm2 = vcmask 146432   ;;  %vm490_vm3 = vcmask 138368   ;;  %s823_s2 = inlined_call_operand.vmem [shape: f32[80,128], index: 2, kind: input, shape index: {}]   ;;  %s824_s1 = inlined_call_operand.vmem [shape: f32[32,8], index: 1, kind: input, shape index: {}]   ;;  %s825_s0 = inlined_call_operand.vmem [shape: f32[16,18], index: 0, kind: input, shape index: {}]   ;;  %s826_s3 = inlined_call_operand.vmem [shape: f32[48,128], index: 3, kind: output, shape index: {}]  }
   0x1   :  { %v14_v0 = vld [vmem:[%s823_s2] sm:$0xff]  ;;  %v17_v2 = vld [vmem:[%s824_s1 + $0x8] sm:$0xff]  ;;  %v18_v3 = vld [vmem:[%s824_s1 + $0x10] sm:$0xff]  ;;  %vm128_vm4 = vcmask 261120   ;;  %v712_v15 = vmov 16   ;;  %v713_v42 = vmov 0.0  }
   0x2   :  { %v16_v1 = vld [vmem:[%s824_s1] sm:$0xff]  ;;  %652 = vmatprep.subr.mxu0 %v14_v0  ;;  %v19_v4 = vld [vmem:[%s824_s1 + $0x18] sm:$0xff]  ;;  %v214_v5 = vld [vmem:[%s823_s2 + $0x30] sm:$0x3]  ;;  %702 = vset.pattern.permute.xlu0 %v712_v15  ;;  %vm714_vm5 = vmmov 0   ;;  %v715_v43 = vmov 17  }
   0x3   :  { %654 = vmatprep.mubr.msk.f32.mxu0 %vm24_vm0, %v16_v1  ;;  %653 = vmatpush3.msra.mxu0 %v14_v0  ;;  %v213_v6 = vld [vmem:[%s823_s2 + $0x28] sm:$0xff]  ;;  %v212_v7 = vld [vmem:[%s823_s2 + $0x20] sm:$0xff]  ;;  %v126_v12 = vld [vmem:[%s823_s2 + $0x10] sm:$0xff]  ;;  %v716_v45 = vmov 0   ;;  %vm527_vm6 = vcmask 1040384   ;;  %vm530_vm7 = vcmask 1042432  }
   0x4   :  { %655 = vmatmul.mubr.msk.f32.vlgmr.msra.gmra.mxu0 %vm24_vm0, %v17_v2  ;;  %671 = vmatprep.subr.msk.mxu0 %vm227_vm1, %v214_v5  ;;  %v770_v8 = vld [vmem:[%s825_s0] sm:$0xff]  ;;  %v211_v9 = vld [vmem:[%s825_s0 + $0x8] sm:$0xff]  ;;  %v127_v41 = vld [vmem:[%s823_s2 + $0x18] sm:$0xff]  ;;  %vm612_vm8 = vcmask 125952  }
   0x5   :  { %657 = vmatprep.mubr.msk.f32.mxu0 %vm24_vm0, %v18_v3  ;;  %672 = vmatpush3.msk.msra.mxu0 %vm227_vm1, %v214_v5  ;;  %v491_v10 = vsel %vm490_vm3, %v770_v8, 0.0  ;;  %v512_v14 = vsel %vm490_vm3, %v211_v9, 0.0  ;;  %v618_v30 = vld [vmem:[%s823_s2 + $0x8] ss:$0 sm:$0xff]  ;;  %v625_v47 = vld [vmem:[%s823_s2 + $0x38] ss:$0 sm:$0xff] }
   0x6   :  { %673 = vmatprep.subr.mxu0 %v213_v6  ;;  %v492_v11 = vrot.slane %v491_v10, 4  ;;  %668 = vmatprep.mubr.msk.f32.mxu1 %vm128_vm4, %v126_v12  ;;  %v513_v16 = vrot.slane %v512_v14, 4  ;;  %v536_v44 = vld [vmem:[%s823_s2 + $0x48] sm:$0xf] }
   0x7   :  { %674 = vmatpush3.msra.mxu0 %v213_v6  ;;  %703 = vset.pattern.permute.xlu1 %v712_v15 }
   0x8   :  { %658 = vmatmul.mubr.msk.f32.gmra.mxu0 %vm24_vm0, %v19_v4  ;;  %675 = vmatprep.subr.mxu0 %v212_v7  ;;  %v493_v13 = vadd.f32 %v492_v11, %v491_v10  ;;  %v514_v18 = vadd.f32 %v513_v16, %v512_v14 }
   0x9   :  { %676 = vmatpush3.msra.mxu0 %v212_v7  ;;  %677 = vmatprep.mubr.msk.f32.mxu0 %vm220_vm2, %v770_v8 }
   0xa   :  { %319 = vperm.xlu0 %702, %v770_v8   ;;  %323 = vperm.xlu1 %703, %v211_v9   ;;  %v494_v17 = vrot.slane %v493_v13, 2  ;;  %v515_v20 = vrot.slane %v514_v18, 2 }
   0xb   :  { %680 = vmatprep.subr.mxu0 %v713_v42 }
   0xc   :  { %678 = vmatmul.mubr.msk.f32.vlgmr.msra.gmra.mxu0 %vm220_vm2, %v211_v9  ;;  %v495_v19 = vadd.f32 %v494_v17, %v493_v13  ;;  %v516_v22 = vadd.f32 %v515_v20, %v514_v18 }
   0xd   :  { %682 = vmatprep.mubr.msk.f32.mxu0 %vm714_vm5, %v713_v42 }
   0xe   :  { %v496_v21 = vrot.slane %v495_v19, 1  ;;  %v517_v24 = vrot.slane %v516_v22, 1 }
  0x10   :  { %v497_v23 = vadd.f32 %v496_v21, %v495_v19  ;;  %v518_v26 = vadd.f32 %v517_v24, %v516_v22 }
  0x12   :  { %v498_v25 = vmax.f32 %v497_v23, 1.0  ;;  %v519_v27 = vmax.f32 %v518_v26, 1.0 }
  0x14   :  { %501 = vperm.xlu0 %702, %v498_v25   ;;  %522 = vperm.xlu1 %703, %v519_v27  }
  0x18   :  { %705 = vset.pattern.permute.xlu1 %v715_v43  ;;  %704 = vset.pattern.permute.xlu0 %v715_v43 }
  0x19   :  { %311 = vperm.xlu1 %705, %v211_v9   ;;  %307 = vperm.xlu0 %704, %v770_v8   ;;  %v535_v8 = vld [vmem:[%s823_s2 + $0x40] sm:$0xf] }
  0x1d   :  { %706 = vset.pattern.permute.xlu1 %v716_v45  ;;  %707 = vset.pattern.permute.xlu0 %v716_v45 }
  0x1e   :  { %539 = vperm.xlu1 %706, %v536_v44  }
  0x85   :  { %v320_v51 = vpop.permute.xlu0 %319  ;;  %v324_v52 = vpop.permute.xlu1 %323 }
  0x8f   :  { %v502_v59 = vpop.permute.xlu0 %501  ;;  %v523_v60 = vpop.permute.xlu1 %522 }
  0x90   :  { %708 = vrcp.f32 %v502_v59 }
  0x91   :  { %710 = vrcp.f32 %v523_v60 }
  0x94   :  { %v312_v26 = vpop.permute.xlu1 %311  ;;  %v308_v27 = vpop.permute.xlu0 %307 }
  0x9d   :  { %v709_v16 = vpop.eup %708 }
  0x9e   :  { %v711_v20 = vpop.eup %710 }
  0xc4   :  { %v656_v28 = vpop.f32.mrf.mxu0 }
  0xc5   :  { %v109_v34 = vadd.f32 %v656_v28, %v618_v30 }
  0xc6   :  { %v103_v29 = vpop.f32.mrf.mxu0 }
  0xc7   :  { %v104_v37 = vadd.f32 %v618_v30, %v103_v29  ;;  %v123_v39 = vmax.f32 %v109_v34, 0.0  ;;  %v540_v34 = vpop.permute.xlu1 %539 }
  0xc8   :  { %v659_v31 = vpop.f32.mrf.mxu0 }
  0xc9   :  { %v119_v32 = vadd.f32 %v659_v31, %v618_v30  ;;  %v122_v40 = vmax.f32 %v104_v37, 0.0 }
  0xca   :  { %v113_v33 = vpop.f32.mrf.mxu0 }
  0xcb   :  { %v125_v35 = vmax.f32 %v119_v32, 0.0  ;;  %v114_v36 = vadd.f32 %v618_v30, %v113_v33 }
  0xcc   :  { %v679_v46 = vpop.f32.mrf.mxu0 }
  0xcd   :  { %v124_v38 = vmax.f32 %v114_v36, 0.0  ;;  %660 = vmatprep.subr.mxu1 %v125_v35  ;;  %v303_v50 = vadd.f32 %v679_v46, %v625_v47 }
  0xce   :  { %661 = vmatpush3.msra.mxu1 %v125_v35  ;;  %v297_v48 = vpop.f32.mrf.mxu0 }
  0xcf   :  { %662 = vmatprep.subr.mxu1 %v124_v38  ;;  %v298_v49 = vadd.f32 %v625_v47, %v297_v48  ;;  %v327_v54 = vmul.f32 %v324_v52, %v303_v50  ;;  %v315_v29 = vmul.f32 %v312_v26, %v303_v50 }
  0xd0   :  { %663 = vmatpush3.msra.mxu1 %v124_v38 }
  0xd1   :  { %664 = vmatprep.subr.mxu1 %v123_v39  ;;  %v326_v53 = vmul.f32 %v320_v51, %v298_v49  ;;  %v506_v56 = vrot.slane %v327_v54, 4  ;;  %v314_v30 = vmul.f32 %v308_v27, %v298_v49  ;;  %317 = vst [vmem:[%s826_s3 + $0x8] sm:$0xff] %v315_v29 }
  0xd2   :  { %665 = vmatpush3.msra.mxu1 %v123_v39 }
  0xd3   :  { %666 = vmatprep.subr.mxu1 %v122_v40  ;;  %v484_v55 = vrot.slane %v326_v53, 4  ;;  %v507_v58 = vadd.f32 %v506_v56, %v327_v54  ;;  %316 = vst [vmem:[%s826_s3] sm:$0xff] %v314_v30 }
  0xd4   :  { %667 = vmatpush3.msra.mxu1 %v122_v40 }
  0xd5   :  { %669 = vmatmul.mubr.msk.f32.vlgmr.msra.gmra.mxu1 %vm128_vm4, %v127_v41  ;;  %690 = vmatprep.subr.mxu1 %v713_v42  ;;  %v485_v57 = vadd.f32 %v484_v55, %v326_v53  ;;  %v508_v62 = vrot.slane %v507_v58, 2 }
  0xd6   :  { %694 = vmatprep.mubr.msk.f32.mxu1 %vm714_vm5, %v713_v42 }
  0xd7   :  { %v486_v61 = vrot.slane %v485_v57, 2  ;;  %v509_v3 = vadd.f32 %v508_v62, %v507_v58 }
  0xd9   :  { %v487_v1 = vadd.f32 %v486_v61, %v485_v57  ;;  %v510_v10 = vrot.slane %v509_v3, 1 }
  0xdb   :  { %v488_v9 = vrot.slane %v487_v1, 1  ;;  %v511_v17 = vadd.f32 %v510_v10, %v509_v3 }
  0xdd   :  { %v489_v15 = vadd.f32 %v488_v9, %v487_v1  ;;  %v526_v25 = vmul.f32 %v711_v20, %v511_v17 }
  0xdf   :  { %v505_v22 = vmul.f32 %v709_v16, %v489_v15 }
 0x195   :  { %v670_v63 = vpop.f32.mrf.mxu1 }
 0x196   :  { %v477_v0 = vrot.slane %v670_v63, 4  ;;  %691 = vmatpush3.xpose.msra.mxu1 %v670_v63 }
 0x197   :  { %v201_v2 = vpop.f32.mrf.mxu1  ;;  %692 = vmatprep.subr.mxu1 %v713_v42 }
 0x198   :  { %v478_v4 = vadd.f32 %v670_v63, %v477_v0  ;;  %v399_v5 = vrot.slane %v201_v2, 4  ;;  %681 = vmatpush3.xpose.msra.mxu0 %v201_v2 }
 0x199   :  { %685 = vmatprep.subr.mxu0 %v713_v42 }
 0x19a   :  { %v479_v6 = vrot.slane %v478_v4, 2  ;;  %v400_v7 = vadd.f32 %v399_v5, %v201_v2  ;;  %693 = vmatpush3.xpose.msra.mxu1 %v201_v2 }
 0x19b   :  { %683 = vmatmul.mubr.f32.vlgmr.msra.gmra.mxu0 %v201_v2 }
 0x19c   :  { %v480_v11 = vadd.f32 %v479_v6, %v478_v4  ;;  %v401_v12 = vrot.slane %v400_v7, 2  ;;  %686 = vmatpush3.xpose.msra.mxu0 %v670_v63  ;;  %687 = vmatprep.mubr.msk.f32.mxu0 %vm714_vm5, %v713_v42 }
 0x19d   :  { %695 = vmatmul.mubr.f32.vlgmr.msra.gmra.mxu1 %v535_v8 }
 0x19e   :  { %v481_v13 = vrot.slane %v480_v11, 1  ;;  %v402_v14 = vadd.f32 %v401_v12, %v400_v7 }
 0x19f   :  { %688 = vmatmul.mubr.f32.vlgmr.msra.gmra.mxu0 %v670_v63 }
 0x1a0   :  { %v482_v18 = vadd.f32 %v481_v13, %v480_v11  ;;  %v403_v19 = vrot.slane %v402_v14, 1 }
 0x1a2   :  { %v404_v21 = vadd.f32 %v403_v19, %v402_v14  ;;  %v483_v23 = vmul.f32 0.125, %v482_v18 }
 0x1a4   :  { %v405_v24 = vmul.f32 0.125, %v404_v21 }
 0x1a6   :  { %v528_v28 = vsel %vm527_vm6, %v405_v24, %v483_v23 }
 0x1a7   :  { %v529_v31 = vsel %vm227_vm1, %v528_v28, %v505_v22 }
 0x1a8   :  { %v531_v32 = vsel %vm530_vm7, %v529_v31, %v526_v25 }
 0x1a9   :  { %532 = vst [vmem:[%s826_s3 + $0x10] sm:$0xf] %v531_v32 }
 0x25b   :  { %v394_v33 = vpop.f32.mrf.mxu0 }
 0x25c   :  { %v398_v35 = vmul.f32 0.17677669, %v394_v33 }
 0x25d   :  { %v684_v36 = vpop.f32.mrf.mxu0  ;;  %v608_v37 = vpop.f32.mrf.mxu1 }
 0x25e   :  { %533 = vst.msk [vmem:[%s826_s3 + $0x18] sm:$0xff] %vm24_vm0, %v398_v35  ;;  %v609_v38 = vadd.f32 %v608_v37, %v540_v34 }
 0x25f   :  { %v472_v39 = vpop.f32.mrf.mxu0  ;;  %v696_v40 = vpop.f32.mrf.mxu1 }
 0x260   :  { %v476_v41 = vmul.f32 0.17677669, %v472_v39  ;;  %613 = vst.msk [vmem:[%s826_s3 + $0x28] sm:$0xf] %vm612_vm8, %v609_v38 }
 0x261   :  { %v689_v42 = vpop.f32.mrf.mxu0 }
 0x262   :  { %534 = vst.msk [vmem:[%s826_s3 + $0x20] sm:$0xff] %vm24_vm0, %v476_v41 }

</bundles_post_ra>
